<compile_context>
chip_gen: v6e
topology: v6e:2x2x1
jax: 0.10.0
libtpu: 0.0.40
codegen_flags: <defaults>
</compile_context>

<pallas_src>
import functools
import math

import jax
import jax.numpy as jnp
from jax.experimental import pallas as pl
from jax.experimental.pallas import tpu as pltpu


def _round_up(x, m):
    return ((x + m - 1) // m) * m


def attention2d_kernel(x_ref, w1_ref, w2_ref, b2_ref, out_ref, acc_ref, *,
                       hw, hw_tile, inv_spatial, inv_temperature):
    # x_ref:  (bt, C, hw_tile)   w1_ref: (C, Hid)   w2_ref: (Hid, K)
    # b2_ref: (1, K)             out_ref: (bt, K)
    # acc_ref: (bt, C, acc_lanes) f32 scratch, persistent along the spatial axis.
    j = pl.program_id(1)
    n_j = pl.cdiv(hw, hw_tile)                  # static int
    last_valid = hw - (n_j - 1) * hw_tile       # static: valid lanes of last tile
    acc_lanes = acc_ref.shape[-1]
    n_chunks = max(1, hw_tile // acc_lanes)

    @pl.when(j == 0)
    def _init():
        acc_ref[...] = jnp.zeros(acc_ref.shape, acc_ref.dtype)

    x = x_ref[...].astype(jnp.float32)

    def accumulate(valid):
        # Fold this block's lanes into the <=128-lane accumulator (pure VALU).
        a = acc_ref[...]
        for k in range(n_chunks):
            lo = k * acc_lanes
            if lo >= valid:                     # fully-padded chunk: skip statically
                continue
            chunk = x[:, :, lo:lo + acc_lanes]
            v = valid - lo
            if v < acc_lanes:                   # ragged chunk: mask padding lanes
                col = jax.lax.broadcasted_iota(jnp.int32, chunk.shape, 2)
                chunk = jnp.where(col < v, chunk, 0.0)
            a = a + chunk
        acc_ref[...] = a

    if last_valid == hw_tile:                   # HW divides evenly: single code path
        accumulate(hw_tile)
    else:
        @pl.when(j < n_j - 1)
        def _full_tiles():
            accumulate(hw_tile)

        @pl.when(j == n_j - 1)
        def _ragged_tile():
            accumulate(last_valid)

    @pl.when(j == n_j - 1)
    def _finalize():
        # Global average pool: one cross-lane reduce, scaled by 1/(H*W).
        pooled = jnp.sum(acc_ref[...], axis=-1) * inv_spatial            # (bt, C)
        # fc1 (1x1 conv, no bias) + ReLU.
        h = jnp.maximum(
            jnp.dot(pooled, w1_ref[...], preferred_element_type=jnp.float32), 0.0)
        # fc2 (1x1 conv, with bias).
        logits = jnp.dot(h, w2_ref[...],
                         preferred_element_type=jnp.float32) + b2_ref[...]
        # softmax(logits / temperature, axis=1).
        z = logits * inv_temperature
        z = z - jnp.max(z, axis=-1, keepdims=True)
        e = jnp.exp(z)
        s = jnp.sum(e, axis=-1, keepdims=True)
        out_ref[...] = (e * pl.reciprocal(s, approx=False)).astype(out_ref.dtype)


def _choose_tiling(B, C, HW, itemsize, budget):
    """Pick (bt, hw_tile) so one x block fits `budget` bytes of VMEM."""
    c_pad = _round_up(C, 8)
    # Output block is (bt, K): bt must be a multiple of 8 or the full batch.
    candidates = [d for d in range(1, B + 1) if B % d == 0 and (d == B or d % 8 == 0)]

    def hw_tile_for(d):
        if HW < 128:
            return HW                                      # full-dim lane block
        cap = (budget // (d * c_pad * itemsize)) // 128 * 128
        cap = max(128, cap)
        return min(_round_up(HW, 128), cap)

    def block_vmem(d):
        return d * c_pad * _round_up(hw_tile_for(d), 128) * itemsize

    def step_bytes(d):                                     # true HBM bytes per step
        return d * C * min(hw_tile_for(d), HW) * itemsize

    fitting = [d for d in candidates if block_vmem(d) <= budget]
    if fitting:
        multi = [d for d in fitting if B // d >= 2]        # keep both v7x cores busy
        pool = multi if multi else fitting
        bt = max(pool, key=lambda d: (step_bytes(d), d))
    else:
        # Graceful fallback: smallest legal batch tile, minimum 128-lane tile;
        # vmem_limit_bytes below is sized from the actual block.
        bt = min(candidates)
    return bt, hw_tile_for(bt)


def attention2d_forward(x_nchw, w1, w2, b2, temperature, *,
                        x_block_budget_bytes=4 << 20):
    """x_nchw: (B, C, H, W) float -> (B, K) float32 softmax gating weights."""
    B, C, H, W = x_nchw.shape
    Hid = w1.shape[1]
    K = w2.shape[1]
    HW = H * W
    itemsize = jnp.dtype(x_nchw.dtype).itemsize

    # Free reshape; no padding copy, no dtype cast (kernel accumulates in f32).
    x_flat = x_nchw.reshape(B, C, HW)

    bt, hw_tile = _choose_tiling(B, C, HW, itemsize, x_block_budget_bytes)
    acc_lanes = min(hw_tile, 128)
    grid = (B // bt, pl.cdiv(HW, hw_tile))

    # Scoped-VMEM limit from the actual blocks (double-buffered) + headroom.
    c_pad = _round_up(C, 8)
    x_buf = bt * c_pad * _round_up(hw_tile, 128) * itemsize
    acc_buf = bt * c_pad * 128 * 4
    small_bufs = (c_pad * _round_up(Hid, 128)
                  + _round_up(Hid, 8) * _round_up(K, 128)
                  + 8 * _round_up(K, 128)
                  + _round_up(bt, 8) * _round_up(K, 128)) * 4
    vmem_limit = int(min(100 << 20,
                         max(32 << 20, 2 * x_buf + acc_buf + 2 * small_bufs + (4 << 20))))

    kernel = functools.partial(
        attention2d_kernel,
        hw=HW, hw_tile=hw_tile,
        inv_spatial=1.0 / float(HW),
        inv_temperature=1.0 / float(temperature))

    cost = pl.CostEstimate(
        flops=int(B * C * HW + 2 * B * (C * Hid + Hid * K)),
        transcendentals=int(B * K),
        bytes_accessed=int(itemsize * B * C * HW
                           + 4 * (C * Hid + Hid * K + K + B * K)))

    return pl.pallas_call(
        kernel,
        out_shape=jax.ShapeDtypeStruct((B, K), jnp.float32),
        grid_spec=pltpu.PrefetchScalarGridSpec(
            num_scalar_prefetch=0,
            grid=grid,
            in_specs=[
                pl.BlockSpec((bt, C, hw_tile), lambda i, j: (i, 0, j)),
                pl.BlockSpec((C, Hid), lambda i, j: (0, 0)),
                pl.BlockSpec((Hid, K), lambda i, j: (0, 0)),
                pl.BlockSpec((1, K), lambda i, j: (0, 0)),
            ],
            out_specs=pl.BlockSpec((bt, K), lambda i, j: (i, 0)),
            scratch_shapes=[pltpu.VMEM((bt, C, acc_lanes), jnp.float32)],
        ),
        compiler_params=pltpu.CompilerParams(
            dimension_semantics=("parallel", "arbitrary"),
            vmem_limit_bytes=vmem_limit),
        cost_estimate=cost,
    )(x_flat, w1, w2, b2)


def init_params(key, in_planes, ratios, K):
    """Deterministic kaiming_normal_(mode='fan_out', nonlinearity='relu') init."""
    if in_planes != 3:
        hidden_planes = int(in_planes * ratios) + 1
    else:
        hidden_planes = K
    k1, k2 = jax.random.split(key)
    # fc1 torch weight: (hidden, in_planes, 1, 1); fan_out = hidden.
    std1 = math.sqrt(2.0 / hidden_planes)
    w1 = std1 * jax.random.normal(k1, (in_planes, hidden_planes), jnp.float32)
    # fc2 torch weight: (K, hidden, 1, 1); fan_out = K.
    std2 = math.sqrt(2.0 / K)
    w2 = std2 * jax.random.normal(k2, (hidden_planes, K), jnp.float32)
    b2 = jnp.zeros((1, K), jnp.float32)  # bias initialized to 0
    return w1, w2, b2


def reference_forward(x_nchw, w1, w2, b2, temperature):
    pooled = jnp.mean(x_nchw, axis=(2, 3))                 # (B, C)
    h = jnp.maximum(pooled @ w1, 0.0)                      # (B, Hid)
    logits = h @ w2 + b2                                   # (B, K)
    return jax.nn.softmax(logits / temperature, axis=1)


if __name__ == "__main__":
    # Module config: in_planes=4, ratios=0.25 -> hidden = int(4*0.25)+1 = 2,
    # K=4 experts, temperature=4 (satisfies temperature % 3 == 1).
    in_planes, ratios, K, temperature = 4, 0.25, 4, 4
    B, H, W = 2, 16, 16

    key = jax.random.PRNGKey(0)
    kx, kp = jax.random.split(key)
    x = jax.random.normal(kx, (B, in_planes, H, W), jnp.float32)
    w1, w2, b2 = init_params(kp, in_planes, ratios, K)

    out = attention2d_forward(x, w1, w2, b2, temperature)
    out = jax.block_until_ready(out)

    ref = reference_forward(x, w1, w2, b2, temperature)
    assert out.shape == (B, K)
    assert jnp.allclose(out, ref, atol=1e-5, rtol=1e-5)
    assert jnp.allclose(jnp.sum(out, axis=1), 1.0, atol=1e-5)

    print("KERNEL_OK")
</pallas_src>

<mosaic_0001>
module attributes {stable_mosaic.version = 11 : i64} {
  func.func @attention2d_kernel(%arg0: i32, %arg1: i32, %arg2: memref<2x4x256xf32, #tpu.memory_space<vmem>>, %arg3: memref<4x2xf32, #tpu.memory_space<vmem>>, %arg4: memref<2x4xf32, #tpu.memory_space<vmem>>, %arg5: memref<1x4xf32, #tpu.memory_space<vmem>>, %arg6: memref<2x4xf32, #tpu.memory_space<vmem>>, %arg7: memref<2x4x128xf32, #tpu.memory_space<vmem>>) attributes {dimension_semantics = [#tpu.dimension_semantics<parallel>, #tpu.dimension_semantics<arbitrary>], iteration_bounds = array<i64: 1, 1>, scalar_prefetch = 0 : i64, scratch_operands = 1 : i64, tpu.core_type = #tpu.core_type<tc>, window_params = [{transform_indices = @transform_0, window_bounds = array<i64: 2, 4, 256>}, {pipeline_mode = #tpu.pipeline_mode<synchronous>, transform_indices = @transform_1, window_bounds = array<i64: 4, 2>}, {pipeline_mode = #tpu.pipeline_mode<synchronous>, transform_indices = @transform_2, window_bounds = array<i64: 2, 4>}, {pipeline_mode = #tpu.pipeline_mode<synchronous>, transform_indices = @transform_3, window_bounds = array<i64: 1, 4>}, {transform_indices = @transform_4, window_bounds = array<i64: 2, 4>}]} {
    %c0_i32 = arith.constant 0 : i32
    %0 = arith.cmpi eq, %arg1, %c0_i32 : i32
    %1 = arith.extui %0 : i1 to i32
    %c0_i32_0 = arith.constant 0 : i32
    %2 = arith.cmpi ne, %1, %c0_i32_0 : i32
    scf.if %2 {
      %cst = arith.constant 0.000000e+00 : f32
      %13 = vector.broadcast %cst : f32 to vector<2x4x128xf32>
      %c0_11 = arith.constant 0 : index
      %c0_12 = arith.constant 0 : index
      %c0_13 = arith.constant 0 : index
      %14 = vector.load %arg7[%c0_11, %c0_12, %c0_13] : memref<2x4x128xf32, #tpu.memory_space<vmem>>, vector<2x4x128xf32>
      tpu.vector_store %arg7[%c0_11, %c0_12, %c0_13], %13 {strides = array<i32>} : memref<2x4x128xf32, #tpu.memory_space<vmem>>, vector<2x4x128xf32>,
    } else {
    }
    %c0 = arith.constant 0 : index
    %c0_1 = arith.constant 0 : index
    %c0_2 = arith.constant 0 : index
    %3 = vector.load %arg2[%c0, %c0_1, %c0_2] : memref<2x4x256xf32, #tpu.memory_space<vmem>>, vector<2x4x256xf32>
    %c0_3 = arith.constant 0 : index
    %c0_4 = arith.constant 0 : index
    %c0_5 = arith.constant 0 : index
    %4 = vector.load %arg7[%c0_3, %c0_4, %c0_5] : memref<2x4x128xf32, #tpu.memory_space<vmem>>, vector<2x4x128xf32>
    %5 = vector.extract_strided_slice %3 {offsets = [0, 0, 0], sizes = [2, 4, 128], strides = [1, 1, 1]} : vector<2x4x256xf32> to vector<2x4x128xf32>
    %6 = arith.addf %4, %5 : vector<2x4x128xf32>
    %7 = vector.extract_strided_slice %3 {offsets = [0, 0, 128], sizes = [2, 4, 128], strides = [1, 1, 1]} : vector<2x4x256xf32> to vector<2x4x128xf32>
    %8 = arith.addf %6, %7 : vector<2x4x128xf32>
    %c0_6 = arith.constant 0 : index
    %c0_7 = arith.constant 0 : index
    %c0_8 = arith.constant 0 : index
    %9 = vector.load %arg7[%c0_6, %c0_7, %c0_8] : memref<2x4x128xf32, #tpu.memory_space<vmem>>, vector<2x4x128xf32>
    tpu.vector_store %arg7[%c0_6, %c0_7, %c0_8], %8 {strides = array<i32>} : memref<2x4x128xf32, #tpu.memory_space<vmem>>, vector<2x4x128xf32>,
    %c0_i32_9 = arith.constant 0 : i32
    %10 = arith.cmpi eq, %arg1, %c0_i32_9 : i32
    %11 = arith.extui %10 : i1 to i32
    %c0_i32_10 = arith.constant 0 : i32
    %12 = arith.cmpi ne, %11, %c0_i32_10 : i32
    scf.if %12 {
      %c0_11 = arith.constant 0 : index
      %c0_12 = arith.constant 0 : index
      %c0_13 = arith.constant 0 : index
      %13 = vector.load %arg7[%c0_11, %c0_12, %c0_13] : memref<2x4x128xf32, #tpu.memory_space<vmem>>, vector<2x4x128xf32>
      %cst = arith.constant dense<0.000000e+00> : vector<2x4xf32>
      %14 = vector.multi_reduction <add>, %13, %cst [2] : vector<2x4x128xf32> to vector<2x4xf32>
      %cst_14 = arith.constant 3.906250e-03 : f32
      %15 = vector.broadcast %cst_14 : f32 to vector<2x4xf32>
      %16 = arith.mulf %14, %15 : vector<2x4xf32>
      %c0_15 = arith.constant 0 : index
      %c0_16 = arith.constant 0 : index
      %17 = vector.load %arg3[%c0_15, %c0_16] : memref<4x2xf32, #tpu.memory_space<vmem>>, vector<4x2xf32>
      %cst_17 = arith.constant dense<0.000000e+00> : vector<2x2xf32>
      %18 = tpu.matmul %16, %17, %cst_17 {dimension_numbers = #tpu.dot_dimension_numbers<[1], [0], [0], [1], [0, 0, 1, 1], [], []>} : vector<2x4xf32>, vector<4x2xf32>, vector<2x2xf32> -> vector<2x2xf32>
      %cst_18 = arith.constant 0.000000e+00 : f32
      %19 = vector.broadcast %cst_18 : f32 to vector<2x2xf32>
      %20 = arith.maximumf %18, %19 : vector<2x2xf32>
      %c0_19 = arith.constant 0 : index
      %c0_20 = arith.constant 0 : index
      %21 = vector.load %arg4[%c0_19, %c0_20] : memref<2x4xf32, #tpu.memory_space<vmem>>, vector<2x4xf32>
      %cst_21 = arith.constant dense<0.000000e+00> : vector<2x4xf32>
      %22 = tpu.matmul %20, %21, %cst_21 {dimension_numbers = #tpu.dot_dimension_numbers<[1], [0], [0], [1], [0, 0, 1, 1], [], []>} : vector<2x2xf32>, vector<2x4xf32>, vector<2x4xf32> -> vector<2x4xf32>
      %c0_22 = arith.constant 0 : index
      %c0_23 = arith.constant 0 : index
      %23 = vector.load %arg5[%c0_22, %c0_23] : memref<1x4xf32, #tpu.memory_space<vmem>>, vector<1x4xf32>
      %24 = vector.broadcast %23 : vector<1x4xf32> to vector<2x4xf32>
      %25 = arith.addf %22, %24 : vector<2x4xf32>
      %cst_24 = arith.constant 2.500000e-01 : f32
      %26 = vector.broadcast %cst_24 : f32 to vector<2x4xf32>
      %27 = arith.mulf %25, %26 : vector<2x4xf32>
      %cst_25 = arith.constant dense<0xFF800000> : vector<2xf32>
      %28 = vector.multi_reduction <maximumf>, %27, %cst_25 [1] : vector<2x4xf32> to vector<2xf32>
      %29 = vector.shape_cast %28 : vector<2xf32> to vector<2x1xf32>
      %30 = vector.broadcast %29 : vector<2x1xf32> to vector<2x4xf32>
      %31 = arith.subf %27, %30 : vector<2x4xf32>
      %32 = math.exp %31 : vector<2x4xf32>
      %cst_26 = arith.constant dense<0.000000e+00> : vector<2xf32>
      %33 = vector.multi_reduction <add>, %32, %cst_26 [1] : vector<2x4xf32> to vector<2xf32>
      %34 = vector.shape_cast %33 : vector<2xf32> to vector<2x1xf32>
      %35 = tpu.reciprocal %34 : vector<2x1xf32> -> vector<2x1xf32>
      %36 = vector.broadcast %35 : vector<2x1xf32> to vector<2x4xf32>
      %37 = arith.mulf %32, %36 : vector<2x4xf32>
      %c0_27 = arith.constant 0 : index
      %c0_28 = arith.constant 0 : index
      %38 = vector.load %arg6[%c0_27, %c0_28] : memref<2x4xf32, #tpu.memory_space<vmem>>, vector<2x4xf32>
      tpu.vector_store %arg6[%c0_27, %c0_28], %37 {strides = array<i32>} : memref<2x4xf32, #tpu.memory_space<vmem>>, vector<2x4xf32>,
    } else {
    }
    return
  }
  func.func @transform_0(%arg0: i32, %arg1: i32) -> (i32, i32, i32) {
    %c0_i32 = arith.constant 0 : i32
    %c0_i32_0 = arith.constant 0 : i32
    return %arg0, %c0_i32, %arg1 : i32, i32, i32
  }
  func.func @transform_1(%arg0: i32, %arg1: i32) -> (i32, i32) {
    %c0_i32 = arith.constant 0 : i32
    %c0_i32_0 = arith.constant 0 : i32
    %c0_i32_1 = arith.constant 0 : i32
    return %c0_i32, %c0_i32_0 : i32, i32
  }
  func.func @transform_2(%arg0: i32, %arg1: i32) -> (i32, i32) {
    %c0_i32 = arith.constant 0 : i32
    %c0_i32_0 = arith.constant 0 : i32
    %c0_i32_1 = arith.constant 0 : i32
    return %c0_i32, %c0_i32_0 : i32, i32
  }
  func.func @transform_3(%arg0: i32, %arg1: i32) -> (i32, i32) {
    %c0_i32 = arith.constant 0 : i32
    %c0_i32_0 = arith.constant 0 : i32
    %c0_i32_1 = arith.constant 0 : i32
    return %c0_i32, %c0_i32_0 : i32, i32
  }
  func.func @transform_4(%arg0: i32, %arg1: i32) -> (i32, i32) {
    %c0_i32 = arith.constant 0 : i32
    %c0_i32_0 = arith.constant 0 : i32
    return %arg0, %c0_i32 : i32, i32
  }
}

</mosaic_0001>

<bundles_post_ra>
// kernel: tpu_custom_call.1
= control target key start
LH: loop header
LB: loop body
LE: loop exit
PB: predicated region body
PF: predicated region fallthrough
CT: control target
= control target key end

     0   :  { %9 = vsyncpa [#allocation4], 0  ;;  %s399_s0 = inlined_call_operand.hbm [shape: f32[2,4,256], index: 0, kind: input, shape index: {}]   ;;  %s400_s1 = inlined_call_operand.vmem [shape: f32[4,2], index: 1, kind: input, shape index: {}]   ;;  %s401_s2 = inlined_call_operand.vmem [shape: f32[2,4], index: 2, kind: input, shape index: {}]   ;;  %s402_s3 = inlined_call_operand.vmem [shape: f32[1,4], index: 3, kind: input, shape index: {}]   ;;  %s403_s4 = inlined_call_operand.hbm [shape: f32[2,4], index: 4, kind: output, shape index: {}]  }
   0x1   :  { %10 = vsyncpa [#allocation5], 0  ;;  %s350_s15 = smov [#allocation3]  }
   0x2   :  { %s16_s16 = sshll.u32 %s350_s15, 4  ;;  %s17_s16 = int_to_ptr.vmem [resolvable:$true] %s16_s16 }
   0x3   :  { %s314_s17 = scalar_lea.vmem %s17_s16, 256  ;;  %p319_p1 = scmp.lt.s32.totalorder %s17_s16, %s17_s16 }
   0x4   :  { %p315_p0 = scmp.ne.s32.totalorder %s17_s16, %s314_s17  ;;  %p320_p2 = scmp.lt.s32.totalorder %s314_s17, %s314_s17 }
   0x6   :  { %p321_p3 = por %p320_p2, %p319_p1 }
   0x8   :  { %p322_p4 = pnand %p321_p3, %p315_p0 }
   0xa   :  { %325 = shalt.err (!%p322_p4)
}
   0xb   :  { %s351_s18 = smov 128   ;;  %s352_s19 = smov 8  }
   0xc   :  { %22 = dma.hbm_to_vmem [thread:$0]  %s399_s0, 256, %s17_s16, [#allocation4], %s351_s18, %s351_s18, %s352_s19  }
   0xd   :  { %346 = dma.done.wait [#allocation4], 256  }
   0xe   :  { %347 = vsyncadd [#allocation4], 4294967040  ;;  %v353_v0 = vmov 0.0   ;;  %v38_v1 = vld [vmem:[#allocation3] sm:$0xff]  ;;  %v39_v2 = vld [vmem:[#allocation3 + $0x8] sm:$0xff]  ;;  %vm59_vm0 = vcmask 1043456   ;;  %v71_v16 = vlaneseq }
   0xf   :  { %36 = vst [vmem:[#allocation2] sm:$0xf] %v353_v0  ;;  %37 = vst [vmem:[#allocation2 + $0x4] sm:$0xf] %v353_v0  ;;  %284 = vmatprep.subr.mxu0 %v353_v0  ;;  %289 = vmatprep.subr.mxu1 %v353_v0  ;;  %v46_v4 = vcombine.high %v38_v1, %v38_v1  ;;  %v47_v6 = vcombine.high %v39_v2, %v39_v2  ;;  %v68_v15 = vld [vmem:[%s400_s1] sm:$0xf] }
  0x10   :  { %285 = vmatpush3.msk.msra.mxu0 %vm59_vm0, %v68_v15  ;;  %vm354_vm1 = vmmov 0   ;;  %v72_v17 = vand.u32 127, %v71_v16  ;;  %v74_v18 = vshrl.u32 %v71_v16, 7  ;;  %vm81_vm2 = vcmask 1041409   ;;  %v160_v27 = vld [vmem:[%s401_s2] sm:$0x3] }
  0x11   :  { %286 = vmatprep.mubr.msk.f32.mxu0 %vm354_vm1, %v353_v0  ;;  %291 = vmatprep.mubr.msk.f32.mxu1 %vm354_vm1, %v353_v0  ;;  %vm83_vm3 = vcmask 31744   ;;  %vm172_vm4 = vcmask 1041408   ;;  %vm168_vm5 = vcmask 15360   ;;  %v277_v31 = vld [vmem:[%s402_s3] ss:$0 sm:$0xff]  ;;  %vm247_vm6 = vcmask 25600  }
  0x12   :  { %v75_v20 = vsub.s32 %v72_v17, %v74_v18  ;;  %290 = vmatpush3.msk.msra.mxu1 %vm172_vm4, %v160_v27  ;;  %s355_s2 = smov [#allocation6]  }
  0x13   :  { %s266_s3 = sshll.u32 %s355_s2, 4  ;;  %s267_s3 = int_to_ptr.vmem [resolvable:$true] %s266_s3 }
  0x14   :  { %s326_s26 = scalar_lea.vmem %s267_s3, 32  ;;  %p331_p6 = scmp.lt.s32.totalorder %s267_s3, %s267_s3 }
  0x15   :  { %p327_p5 = scmp.ne.s32.totalorder %s267_s3, %s326_s26  ;;  %p332_p7 = scmp.lt.s32.totalorder %s326_s26, %s326_s26 }
  0x16   :  { %v40_v3 = vld [vmem:[#allocation2] sm:$0xf]  ;;  %v41_v5 = vld [vmem:[#allocation2 + $0x4] sm:$0xf] }
  0x17   :  { %v42_v7 = vadd.f32 %v40_v3, %v38_v1  ;;  %v43_v8 = vadd.f32 %v41_v5, %v39_v2  ;;  %p333_p8 = por %p332_p7, %p331_p6 }
  0x19   :  { %v50_v9 = vadd.f32 %v46_v4, %v42_v7  ;;  %v51_v10 = vadd.f32 %v47_v6, %v43_v8  ;;  %p334_p9 = pnand %p333_p8, %p327_p5 }
  0x1b   :  { %52 = vst [vmem:[#allocation2] sm:$0xf] %v50_v9  ;;  %53 = vst [vmem:[#allocation2 + $0x4] sm:$0xf] %v51_v10 }
  0x22   :  { %v57_v11 = vld [vmem:[#allocation2] sm:$0xf]  ;;  %v58_v12 = vld [vmem:[#allocation2 + $0x4] sm:$0xf] }
  0x23   :  { %v60_v13 = vsel %vm59_vm0, %v57_v11, 0.0  ;;  %v63_v14 = vsel %vm59_vm0, %v58_v12, 0.0 }
  0x24   :  { %61 = vadd.xlane.f32.xlu0 %v60_v13 }
  0x28   :  { %64 = vadd.xlane.f32.xlu0 %v63_v14 }
  0xad   :  { %v62_v19 = vpop.xlane.xlu0 %61 }
  0xae   :  { %v66_v21 = vmul.f32 0.00390625, %v62_v19 }
  0xb0   :  { %v76_v24 = vrot.slane %v66_v21, %v75_v20 }
  0xb1   :  { %v65_v22 = vpop.xlane.xlu0 %64 }
  0xb2   :  { %v67_v23 = vmul.f32 0.00390625, %v65_v22 }
  0xb4   :  { %v80_v25 = vrot.slane %v67_v23, %v75_v20 }
  0xb6   :  { %v82_v26 = vsel %vm81_vm2, %v80_v25, %v76_v24 }
  0xb7   :  { %287 = vmatmul.mubr.msk.f32.vlgmr.msra.gmra.mxu0 %vm83_vm3, %v82_v26 }
 0x177   :  { %v155_v28 = vpop.f32.mrf.mxu0 }
 0x178   :  { %v159_v29 = vmax.f32 %v155_v28, 0.0 }
 0x179   :  { %v288_v30 = vpop.f32.mrf.mxu0 }
 0x17a   :  { %292 = vmatmul.mubr.msk.f32.vlgmr.msra.gmra.mxu1 %vm168_vm5, %v159_v29 }
 0x23a   :  { %v242_v32 = vpop.f32.mrf.mxu1 }
 0x23b   :  { %v243_v33 = vadd.f32 %v277_v31, %v242_v32 }
 0x23c   :  { %v293_v34 = vpop.f32.mrf.mxu1 }
 0x23d   :  { %v246_v35 = vmul.f32 0.25, %v243_v33 }
 0x23f   :  { %v248_v36 = vsel %vm247_vm6, %v246_v35, -inf }
 0x240   :  { %249 = vmax.xlane.f32.xlu1 %v248_v36 }
 0x2c9   :  { %v250_v37 = vpop.xlane.xlu1 %249 }
 0x2ca   :  { %v251_v38 = vsub.f32 %v246_v35, %v250_v37 }
 0x2cc   :  { %v252_v39 = vmul.f32 1.442695, %v251_v38 }
 0x2ce   :  { %302 = vpow2.f32 %v252_v39 }
 0x2db   :  { %v303_v40 = vpop.eup %302 }
 0x2dc   :  { %v254_v41 = vsel %vm247_vm6, %v303_v40, 0.0 }
 0x2dd   :  { %255 = vadd.xlane.f32.xlu1 %v254_v41 }
 0x366   :  { %v256_v42 = vpop.xlane.xlu1 %255 }
 0x367   :  { %304 = vrcp.f32 %v256_v42 }
 0x374   :  { %v305_v43 = vpop.eup %304 }
 0x375   :  { %v258_v44 = vmul.f32 %v305_v43, %v303_v40 }
 0x377   :  { %259 = vst.msk [vmem:[#allocation6] sm:$0x3] %vm247_vm6, %v258_v44 }
 0x378   :  { %337 = shalt.err (!%p334_p9)
}
 0x379   :  { %269 = dma.vmem_to_hbm [thread:$0]  %s267_s3, 32, %s403_s4, [#allocation5]  }
 0x37a   :  { %348 = dma.done.wait [#allocation5], 32  }
 0x37b   :  { %349 = vsyncadd [#allocation5], 4294967264 }
 0x37c   :  { %273 = vsyncpa [#allocation4], 1 }
 0x37d   :  { %274 = vsyncpa [#allocation5], 1 }

</bundles_post_ra>
